<compile_context>
chip_gen: v7x
topology: tpu7x:2x2x1
jax: 0.10.0
libtpu: 0.0.40
codegen_flags: <defaults>
</compile_context>

<pallas_src>
import jax
import jax.numpy as jnp
from jax.experimental import pallas as pl
from jax.experimental.pallas import tpu as pltpu


# ----------------------------------------------------------------------------
# In-kernel helpers (training-mode BatchNorm1d with gamma=1/beta=0, ELU).
# ----------------------------------------------------------------------------
def _bn(z, eps=1e-5):
    # nn.BatchNorm1d train mode: biased variance over the batch axis.
    # (weight_init_xavier_uniform only re-inits BatchNorm2d, so gamma=1, beta=0.)
    mean = jnp.mean(z, axis=0, keepdims=True)
    var = jnp.mean((z - mean) ** 2, axis=0, keepdims=True)
    return (z - mean) * jax.lax.rsqrt(var + eps)


def _elu(x):
    # Clamp exp argument: large positive x would otherwise produce inf in the
    # (selected-away) branch.
    return jnp.where(x > 0, x, jnp.exp(jnp.minimum(x, 0.0)) - 1.0)


# ----------------------------------------------------------------------------
# Fused kernel: propagation over all edge categories + concat + MLP.
# ----------------------------------------------------------------------------
def hgnn_fused_kernel(a_ref, x_ref, ws_ref, w0_ref, b0_ref, w1_ref, b1_ref,
                      w2_ref, b2_ref, o_ref):
    # a_ref : (num_edge_cat, 2, num_edges) int32 COO indices
    # x_ref : (N, F)     ws_ref: (num_edge_cat, F, G)
    # w*_ref: MLP weights stored (in, out); b*_ref: (1, out)
    X = x_ref[...]                                   # (N, F) float32
    N = X.shape[0]
    num_edge_cat = a_ref.shape[0]
    num_edges = a_ref.shape[2]
    G = ws_ref.shape[-1]
    L0 = w0_ref.shape[1]

    # Shared row-iota for building one-hot selector matrices (N, num_edges).
    row_iota = jax.lax.broadcasted_iota(jnp.int32, (N, num_edges), 0)

    # z = cat_e(E_e @ X @ W_e) @ W0 + b0, with the concat folded into row-block
    # slices of W0 (mathematically identical, no concatenate op needed).
    z = jnp.zeros((N, L0), jnp.float32)
    for e in range(num_edge_cat):                    # static unroll (tiny count)
        idx = a_ref[e]                               # (2, num_edges) int32
        s_src = (row_iota == idx[0:1, :]).astype(jnp.float32)   # (N, E)
        s_dst = (row_iota == idx[1:2, :]).astype(jnp.float32)   # (N, E)
        # S_dst^T @ X : per-edge gather of X rows (duplicate edges sum).
        gathered = jax.lax.dot_general(
            s_dst, X, (((0,), (0,)), ((), ())),
            preferred_element_type=jnp.float32)                  # (E, F)
        ex = jnp.dot(s_src, gathered,
                     preferred_element_type=jnp.float32)         # (N, F) == E_e @ X
        h_e = jnp.dot(ex, ws_ref[e],
                      preferred_element_type=jnp.float32)        # (N, G)
        z = z + jnp.dot(h_e, w0_ref[e * G:(e + 1) * G, :],
                        preferred_element_type=jnp.float32)      # (N, L0)
    z = z + b0_ref[...]

    # NodeEmbedding MLP tail.
    z = _elu(_bn(z))
    z = jnp.dot(z, w1_ref[...], preferred_element_type=jnp.float32) + b1_ref[...]
    z = _elu(_bn(z))
    o_ref[...] = (
        jnp.dot(z, w2_ref[...], preferred_element_type=jnp.float32) + b2_ref[...]
    )


# ----------------------------------------------------------------------------
# Wrapper: single pallas_call, everything VMEM-resident.
# ----------------------------------------------------------------------------
def hgnn_forward(A_indices, X, Ws, mlp_params):
    """A_indices: (num_edge_cat, 2, num_edges) int32 COO edge lists.
    X: (N, F) float32.  Ws: (num_edge_cat, F, G).  mlp_params: (w0,b0,...,b2)."""
    N, F = X.shape
    num_edge_cat, _, num_edges = A_indices.shape
    G = Ws.shape[-1]
    w0, b0, w1, b1, w2, b2 = mlp_params
    L0, L1, emb = w0.shape[1], w1.shape[1], w2.shape[1]

    flops = int(
        2 * num_edge_cat * (num_edges * N * F      # S_dst^T @ X
                            + N * num_edges * F    # S_src @ gathered
                            + N * F * G            # (E_e X) @ W_e
                            + N * G * L0)          # H_e @ W0-block
        + 2 * N * (L0 * L1 + L1 * emb)             # MLP tail
    )
    transcendentals = int(N * (L0 + L1) + 2 * (L0 + L1))   # ELU exps + BN rsqrt
    bytes_accessed = int(4 * (A_indices.size + X.size + Ws.size + w0.size
                              + b0.size + w1.size + b1.size + w2.size + b2.size
                              + N * emb))

    vmem_spec = pl.BlockSpec(memory_space=pltpu.MemorySpace.VMEM)

    # TODO(synk): for large N, add a row-tiling grid axis over X / output
    # (blocks of rows of S_src) instead of the gridless whole-array layout.
    return pl.pallas_call(
        hgnn_fused_kernel,
        out_shape=jax.ShapeDtypeStruct((N, emb), jnp.float32),
        in_specs=[vmem_spec] * 9,
        out_specs=vmem_spec,
        cost_estimate=pl.CostEstimate(
            flops=flops,
            transcendentals=transcendentals,
            bytes_accessed=bytes_accessed,
        ),
    )(A_indices, X, Ws, w0, b0, w1, b1, w2, b2)


# ----------------------------------------------------------------------------
# Pure-JAX reference (matches the PyTorch forward) for a sanity check.
# ----------------------------------------------------------------------------
def hgnn_reference(A_indices, X, Ws, mlp_params):
    N = X.shape[0]
    num_edge_cat = A_indices.shape[0]
    hi = jax.lax.Precision.HIGHEST

    def densify(idx):
        return jnp.zeros((N, N), jnp.float32).at[idx[0], idx[1]].add(1.0)

    E = jax.vmap(densify)(A_indices)
    Hs = [jnp.dot(jnp.dot(E[e], X, precision=hi), Ws[e], precision=hi)
          for e in range(num_edge_cat)]
    H = jnp.concatenate(Hs, axis=1)

    w0, b0, w1, b1, w2, b2 = mlp_params

    def bn(z, eps=1e-5):
        m = jnp.mean(z, axis=0, keepdims=True)
        v = jnp.mean((z - m) ** 2, axis=0, keepdims=True)
        return (z - m) * jax.lax.rsqrt(v + eps)

    def elu(x):
        return jnp.where(x > 0, x, jnp.exp(jnp.minimum(x, 0.0)) - 1.0)

    z = elu(bn(jnp.dot(H, w0, precision=hi) + b0))
    z = elu(bn(jnp.dot(z, w1, precision=hi) + b1))
    return jnp.dot(z, w2, precision=hi) + b2


# ----------------------------------------------------------------------------
# Deterministic parameter construction (synthetic, xavier-uniform style).
# ----------------------------------------------------------------------------
def xavier_uniform(key, shape):
    fan_in, fan_out = shape[-2], shape[-1]
    limit = jnp.sqrt(6.0 / (fan_in + fan_out))
    return jax.random.uniform(key, shape, jnp.float32, -limit, limit)


if __name__ == "__main__":
    key = jax.random.PRNGKey(0)

    # HGNN hyper-parameters (small, consistent with the module).
    feature_size = 16
    graph_embedding_size = 32
    embedding_size = 24
    layers = [20, 30, 40]   # layers[-1] unused by NodeEmbedding (as in PyTorch)
    num_edge_cat = 3
    num_nodes = 12
    num_edges = 24

    k = jax.random.split(key, 8)

    # Graph inputs.
    X = jax.random.normal(k[0], (num_nodes, feature_size), jnp.float32)
    A_indices = jax.random.randint(
        k[1], (num_edge_cat, 2, num_edges), 0, num_nodes, jnp.int32
    )

    # Per-edge-category propagation weights (glorot).
    Ws = xavier_uniform(k[2], (num_edge_cat, feature_size, graph_embedding_size))

    # NodeEmbedding MLP parameters (weights stored pre-transposed as (in, out)).
    in_dim = graph_embedding_size * num_edge_cat
    w0 = xavier_uniform(k[3], (in_dim, layers[0]))
    b0 = 0.01 * jnp.ones((1, layers[0]), jnp.float32)
    w1 = xavier_uniform(k[4], (layers[0], layers[1]))
    b1 = 0.01 * jnp.ones((1, layers[1]), jnp.float32)
    w2 = xavier_uniform(k[5], (layers[1], embedding_size))
    b2 = 0.01 * jnp.ones((1, embedding_size), jnp.float32)
    mlp_params = (w0, b0, w1, b1, w2, b2)

    # TODO(synk): only the mini_batch=False branch is implemented; the
    # mini_batch=True branch is the same math batched over b (pure glue).

    out = hgnn_forward(A_indices, X, Ws, mlp_params)
    out = jax.block_until_ready(out)

    assert out.shape == (num_nodes, embedding_size)
    assert bool(jnp.all(jnp.isfinite(out)))

    ref = jax.block_until_ready(hgnn_reference(A_indices, X, Ws, mlp_params))
    assert bool(jnp.allclose(out, ref, atol=2e-2, rtol=2e-2)), (
        "mismatch vs reference: max abs diff "
        f"{float(jnp.max(jnp.abs(out - ref)))}"
    )

    print("KERNEL_OK")
</pallas_src>

<mosaic_0001>
module attributes {stable_mosaic.version = 11 : i64} {
  func.func @hgnn_fused_kernel(%arg0: memref<3x2x24xi32, #tpu.memory_space<vmem>>, %arg1: memref<12x16xf32, #tpu.memory_space<vmem>>, %arg2: memref<3x16x32xf32, #tpu.memory_space<vmem>>, %arg3: memref<96x20xf32, #tpu.memory_space<vmem>>, %arg4: memref<1x20xf32, #tpu.memory_space<vmem>>, %arg5: memref<20x30xf32, #tpu.memory_space<vmem>>, %arg6: memref<1x30xf32, #tpu.memory_space<vmem>>, %arg7: memref<30x24xf32, #tpu.memory_space<vmem>>, %arg8: memref<1x24xf32, #tpu.memory_space<vmem>>, %arg9: memref<12x24xf32, #tpu.memory_space<vmem>>) attributes {dimension_semantics = [], scalar_prefetch = 0 : i64, scratch_operands = 0 : i64, tpu.core_type = #tpu.core_type<tc>} {
    %c0 = arith.constant 0 : index
    %c0_0 = arith.constant 0 : index
    %0 = vector.load %arg1[%c0, %c0_0] : memref<12x16xf32, #tpu.memory_space<vmem>>, vector<12x16xf32>
    %1 = tpu.iota {dimensions = array<i32: 0>} : vector<12x24xi32>
    %cst = arith.constant 0.000000e+00 : f32
    %2 = vector.broadcast %cst : f32 to vector<12x20xf32>
    %c0_1 = arith.constant 0 : index
    %c0_2 = arith.constant 0 : index
    %c0_3 = arith.constant 0 : index
    %3 = vector.load %arg0[%c0_1, %c0_2, %c0_3] : memref<3x2x24xi32, #tpu.memory_space<vmem>>, vector<1x2x24xi32>
    %4 = vector.shape_cast %3 : vector<1x2x24xi32> to vector<2x24xi32>
    %5 = vector.extract_strided_slice %4 {offsets = [0, 0], sizes = [1, 24], strides = [1, 1]} : vector<2x24xi32> to vector<1x24xi32>
    %6 = vector.broadcast %5 : vector<1x24xi32> to vector<12x24xi32>
    %7 = arith.cmpi eq, %1, %6 : vector<12x24xi32>
    %8 = arith.extui %7 : vector<12x24xi1> to vector<12x24xi32>
    %9 = arith.sitofp %8 : vector<12x24xi32> to vector<12x24xf32>
    %10 = vector.extract_strided_slice %4 {offsets = [1, 0], sizes = [1, 24], strides = [1, 1]} : vector<2x24xi32> to vector<1x24xi32>
    %11 = vector.broadcast %10 : vector<1x24xi32> to vector<12x24xi32>
    %12 = arith.cmpi eq, %1, %11 : vector<12x24xi32>
    %13 = arith.extui %12 : vector<12x24xi1> to vector<12x24xi32>
    %14 = arith.sitofp %13 : vector<12x24xi32> to vector<12x24xf32>
    %cst_4 = arith.constant dense<0.000000e+00> : vector<24x16xf32>
    %15 = tpu.matmul %14, %0, %cst_4 {dimension_numbers = #tpu.dot_dimension_numbers<[0], [0], [1], [1], [0, 1, 1, 1], [], []>} : vector<12x24xf32>, vector<12x16xf32>, vector<24x16xf32> -> vector<24x16xf32>
    %cst_5 = arith.constant dense<0.000000e+00> : vector<12x16xf32>
    %16 = tpu.matmul %9, %15, %cst_5 {dimension_numbers = #tpu.dot_dimension_numbers<[1], [0], [0], [1], [0, 0, 1, 1], [], []>} : vector<12x24xf32>, vector<24x16xf32>, vector<12x16xf32> -> vector<12x16xf32>
    %c0_6 = arith.constant 0 : index
    %c0_7 = arith.constant 0 : index
    %c0_8 = arith.constant 0 : index
    %17 = vector.load %arg2[%c0_6, %c0_7, %c0_8] : memref<3x16x32xf32, #tpu.memory_space<vmem>>, vector<1x16x32xf32>
    %18 = vector.shape_cast %17 : vector<1x16x32xf32> to vector<16x32xf32>
    %cst_9 = arith.constant dense<0.000000e+00> : vector<12x32xf32>
    %19 = tpu.matmul %16, %18, %cst_9 {dimension_numbers = #tpu.dot_dimension_numbers<[1], [0], [0], [1], [0, 0, 1, 1], [], []>} : vector<12x16xf32>, vector<16x32xf32>, vector<12x32xf32> -> vector<12x32xf32>
    %c0_10 = arith.constant 0 : index
    %c0_11 = arith.constant 0 : index
    %20 = vector.load %arg3[%c0_10, %c0_11] : memref<96x20xf32, #tpu.memory_space<vmem>>, vector<32x20xf32>
    %cst_12 = arith.constant dense<0.000000e+00> : vector<12x20xf32>
    %21 = tpu.matmul %19, %20, %cst_12 {dimension_numbers = #tpu.dot_dimension_numbers<[1], [0], [0], [1], [0, 0, 1, 1], [], []>} : vector<12x32xf32>, vector<32x20xf32>, vector<12x20xf32> -> vector<12x20xf32>
    %22 = arith.addf %2, %21 : vector<12x20xf32>
    %c1 = arith.constant 1 : index
    %c0_13 = arith.constant 0 : index
    %c0_14 = arith.constant 0 : index
    %23 = vector.load %arg0[%c1, %c0_13, %c0_14] : memref<3x2x24xi32, #tpu.memory_space<vmem>>, vector<1x2x24xi32>
    %24 = vector.shape_cast %23 : vector<1x2x24xi32> to vector<2x24xi32>
    %25 = vector.extract_strided_slice %24 {offsets = [0, 0], sizes = [1, 24], strides = [1, 1]} : vector<2x24xi32> to vector<1x24xi32>
    %26 = vector.broadcast %25 : vector<1x24xi32> to vector<12x24xi32>
    %27 = arith.cmpi eq, %1, %26 : vector<12x24xi32>
    %28 = arith.extui %27 : vector<12x24xi1> to vector<12x24xi32>
    %29 = arith.sitofp %28 : vector<12x24xi32> to vector<12x24xf32>
    %30 = vector.extract_strided_slice %24 {offsets = [1, 0], sizes = [1, 24], strides = [1, 1]} : vector<2x24xi32> to vector<1x24xi32>
    %31 = vector.broadcast %30 : vector<1x24xi32> to vector<12x24xi32>
    %32 = arith.cmpi eq, %1, %31 : vector<12x24xi32>
    %33 = arith.extui %32 : vector<12x24xi1> to vector<12x24xi32>
    %34 = arith.sitofp %33 : vector<12x24xi32> to vector<12x24xf32>
    %cst_15 = arith.constant dense<0.000000e+00> : vector<24x16xf32>
    %35 = tpu.matmul %34, %0, %cst_15 {dimension_numbers = #tpu.dot_dimension_numbers<[0], [0], [1], [1], [0, 1, 1, 1], [], []>} : vector<12x24xf32>, vector<12x16xf32>, vector<24x16xf32> -> vector<24x16xf32>
    %cst_16 = arith.constant dense<0.000000e+00> : vector<12x16xf32>
    %36 = tpu.matmul %29, %35, %cst_16 {dimension_numbers = #tpu.dot_dimension_numbers<[1], [0], [0], [1], [0, 0, 1, 1], [], []>} : vector<12x24xf32>, vector<24x16xf32>, vector<12x16xf32> -> vector<12x16xf32>
    %c1_17 = arith.constant 1 : index
    %c0_18 = arith.constant 0 : index
    %c0_19 = arith.constant 0 : index
    %37 = vector.load %arg2[%c1_17, %c0_18, %c0_19] : memref<3x16x32xf32, #tpu.memory_space<vmem>>, vector<1x16x32xf32>
    %38 = vector.shape_cast %37 : vector<1x16x32xf32> to vector<16x32xf32>
    %cst_20 = arith.constant dense<0.000000e+00> : vector<12x32xf32>
    %39 = tpu.matmul %36, %38, %cst_20 {dimension_numbers = #tpu.dot_dimension_numbers<[1], [0], [0], [1], [0, 0, 1, 1], [], []>} : vector<12x16xf32>, vector<16x32xf32>, vector<12x32xf32> -> vector<12x32xf32>
    %c32 = arith.constant 32 : index
    %c0_21 = arith.constant 0 : index
    %40 = vector.load %arg3[%c32, %c0_21] : memref<96x20xf32, #tpu.memory_space<vmem>>, vector<32x20xf32>
    %cst_22 = arith.constant dense<0.000000e+00> : vector<12x20xf32>
    %41 = tpu.matmul %39, %40, %cst_22 {dimension_numbers = #tpu.dot_dimension_numbers<[1], [0], [0], [1], [0, 0, 1, 1], [], []>} : vector<12x32xf32>, vector<32x20xf32>, vector<12x20xf32> -> vector<12x20xf32>
    %42 = arith.addf %22, %41 : vector<12x20xf32>
    %c2 = arith.constant 2 : index
    %c0_23 = arith.constant 0 : index
    %c0_24 = arith.constant 0 : index
    %43 = vector.load %arg0[%c2, %c0_23, %c0_24] : memref<3x2x24xi32, #tpu.memory_space<vmem>>, vector<1x2x24xi32>
    %44 = vector.shape_cast %43 : vector<1x2x24xi32> to vector<2x24xi32>
    %45 = vector.extract_strided_slice %44 {offsets = [0, 0], sizes = [1, 24], strides = [1, 1]} : vector<2x24xi32> to vector<1x24xi32>
    %46 = vector.broadcast %45 : vector<1x24xi32> to vector<12x24xi32>
    %47 = arith.cmpi eq, %1, %46 : vector<12x24xi32>
    %48 = arith.extui %47 : vector<12x24xi1> to vector<12x24xi32>
    %49 = arith.sitofp %48 : vector<12x24xi32> to vector<12x24xf32>
    %50 = vector.extract_strided_slice %44 {offsets = [1, 0], sizes = [1, 24], strides = [1, 1]} : vector<2x24xi32> to vector<1x24xi32>
    %51 = vector.broadcast %50 : vector<1x24xi32> to vector<12x24xi32>
    %52 = arith.cmpi eq, %1, %51 : vector<12x24xi32>
    %53 = arith.extui %52 : vector<12x24xi1> to vector<12x24xi32>
    %54 = arith.sitofp %53 : vector<12x24xi32> to vector<12x24xf32>
    %cst_25 = arith.constant dense<0.000000e+00> : vector<24x16xf32>
    %55 = tpu.matmul %54, %0, %cst_25 {dimension_numbers = #tpu.dot_dimension_numbers<[0], [0], [1], [1], [0, 1, 1, 1], [], []>} : vector<12x24xf32>, vector<12x16xf32>, vector<24x16xf32> -> vector<24x16xf32>
    %cst_26 = arith.constant dense<0.000000e+00> : vector<12x16xf32>
    %56 = tpu.matmul %49, %55, %cst_26 {dimension_numbers = #tpu.dot_dimension_numbers<[1], [0], [0], [1], [0, 0, 1, 1], [], []>} : vector<12x24xf32>, vector<24x16xf32>, vector<12x16xf32> -> vector<12x16xf32>
    %c2_27 = arith.constant 2 : index
    %c0_28 = arith.constant 0 : index
    %c0_29 = arith.constant 0 : index
    %57 = vector.load %arg2[%c2_27, %c0_28, %c0_29] : memref<3x16x32xf32, #tpu.memory_space<vmem>>, vector<1x16x32xf32>
    %58 = vector.shape_cast %57 : vector<1x16x32xf32> to vector<16x32xf32>
    %cst_30 = arith.constant dense<0.000000e+00> : vector<12x32xf32>
    %59 = tpu.matmul %56, %58, %cst_30 {dimension_numbers = #tpu.dot_dimension_numbers<[1], [0], [0], [1], [0, 0, 1, 1], [], []>} : vector<12x16xf32>, vector<16x32xf32>, vector<12x32xf32> -> vector<12x32xf32>
    %c64 = arith.constant 64 : index
    %c0_31 = arith.constant 0 : index
    %60 = vector.load %arg3[%c64, %c0_31] : memref<96x20xf32, #tpu.memory_space<vmem>>, vector<32x20xf32>
    %cst_32 = arith.constant dense<0.000000e+00> : vector<12x20xf32>
    %61 = tpu.matmul %59, %60, %cst_32 {dimension_numbers = #tpu.dot_dimension_numbers<[1], [0], [0], [1], [0, 0, 1, 1], [], []>} : vector<12x32xf32>, vector<32x20xf32>, vector<12x20xf32> -> vector<12x20xf32>
    %62 = arith.addf %42, %61 : vector<12x20xf32>
    %c0_33 = arith.constant 0 : index
    %c0_34 = arith.constant 0 : index
    %63 = vector.load %arg4[%c0_33, %c0_34] : memref<1x20xf32, #tpu.memory_space<vmem>>, vector<1x20xf32>
    %64 = vector.broadcast %63 : vector<1x20xf32> to vector<12x20xf32>
    %65 = arith.addf %62, %64 : vector<12x20xf32>
    %cst_35 = arith.constant dense<0.000000e+00> : vector<20xf32>
    %66 = vector.multi_reduction <add>, %65, %cst_35 [0] : vector<12x20xf32> to vector<20xf32>
    %67 = vector.shape_cast %66 : vector<20xf32> to vector<1x20xf32>
    %cst_36 = arith.constant 1.200000e+01 : f32
    %68 = vector.broadcast %cst_36 : f32 to vector<1x20xf32>
    %69 = arith.divf %67, %68 : vector<1x20xf32>
    %70 = vector.broadcast %69 : vector<1x20xf32> to vector<12x20xf32>
    %71 = arith.subf %65, %70 : vector<12x20xf32>
    %72 = arith.mulf %71, %71 : vector<12x20xf32>
    %cst_37 = arith.constant dense<0.000000e+00> : vector<20xf32>
    %73 = vector.multi_reduction <add>, %72, %cst_37 [0] : vector<12x20xf32> to vector<20xf32>
    %74 = vector.shape_cast %73 : vector<20xf32> to vector<1x20xf32>
    %cst_38 = arith.constant 1.200000e+01 : f32
    %75 = vector.broadcast %cst_38 : f32 to vector<1x20xf32>
    %76 = arith.divf %74, %75 : vector<1x20xf32>
    %77 = vector.broadcast %69 : vector<1x20xf32> to vector<12x20xf32>
    %78 = arith.subf %65, %77 : vector<12x20xf32>
    %cst_39 = arith.constant 9.99999974E-6 : f32
    %79 = vector.broadcast %cst_39 : f32 to vector<1x20xf32>
    %80 = arith.addf %76, %79 : vector<1x20xf32>
    %81 = math.rsqrt %80 : vector<1x20xf32>
    %82 = vector.broadcast %81 : vector<1x20xf32> to vector<12x20xf32>
    %83 = arith.mulf %78, %82 : vector<12x20xf32>
    %cst_40 = arith.constant 0.000000e+00 : f32
    %84 = vector.broadcast %cst_40 : f32 to vector<12x20xf32>
    %85 = arith.cmpf ogt, %83, %84 : vector<12x20xf32>
    %cst_41 = arith.constant 0.000000e+00 : f32
    %86 = vector.broadcast %cst_41 : f32 to vector<12x20xf32>
    %87 = arith.minimumf %83, %86 : vector<12x20xf32>
    %88 = math.exp %87 : vector<12x20xf32>
    %cst_42 = arith.constant 1.000000e+00 : f32
    %89 = vector.broadcast %cst_42 : f32 to vector<12x20xf32>
    %90 = arith.subf %88, %89 : vector<12x20xf32>
    %91 = arith.select %85, %83, %90 : vector<12x20xi1>, vector<12x20xf32>
    %c0_43 = arith.constant 0 : index
    %c0_44 = arith.constant 0 : index
    %92 = vector.load %arg5[%c0_43, %c0_44] : memref<20x30xf32, #tpu.memory_space<vmem>>, vector<20x30xf32>
    %cst_45 = arith.constant dense<0.000000e+00> : vector<12x30xf32>
    %93 = tpu.matmul %91, %92, %cst_45 {dimension_numbers = #tpu.dot_dimension_numbers<[1], [0], [0], [1], [0, 0, 1, 1], [], []>} : vector<12x20xf32>, vector<20x30xf32>, vector<12x30xf32> -> vector<12x30xf32>
    %c0_46 = arith.constant 0 : index
    %c0_47 = arith.constant 0 : index
    %94 = vector.load %arg6[%c0_46, %c0_47] : memref<1x30xf32, #tpu.memory_space<vmem>>, vector<1x30xf32>
    %95 = vector.broadcast %94 : vector<1x30xf32> to vector<12x30xf32>
    %96 = arith.addf %93, %95 : vector<12x30xf32>
    %cst_48 = arith.constant dense<0.000000e+00> : vector<30xf32>
    %97 = vector.multi_reduction <add>, %96, %cst_48 [0] : vector<12x30xf32> to vector<30xf32>
    %98 = vector.shape_cast %97 : vector<30xf32> to vector<1x30xf32>
    %cst_49 = arith.constant 1.200000e+01 : f32
    %99 = vector.broadcast %cst_49 : f32 to vector<1x30xf32>
    %100 = arith.divf %98, %99 : vector<1x30xf32>
    %101 = vector.broadcast %100 : vector<1x30xf32> to vector<12x30xf32>
    %102 = arith.subf %96, %101 : vector<12x30xf32>
    %103 = arith.mulf %102, %102 : vector<12x30xf32>
    %cst_50 = arith.constant dense<0.000000e+00> : vector<30xf32>
    %104 = vector.multi_reduction <add>, %103, %cst_50 [0] : vector<12x30xf32> to vector<30xf32>
    %105 = vector.shape_cast %104 : vector<30xf32> to vector<1x30xf32>
    %cst_51 = arith.constant 1.200000e+01 : f32
    %106 = vector.broadcast %cst_51 : f32 to vector<1x30xf32>
    %107 = arith.divf %105, %106 : vector<1x30xf32>
    %108 = vector.broadcast %100 : vector<1x30xf32> to vector<12x30xf32>
    %109 = arith.subf %96, %108 : vector<12x30xf32>
    %cst_52 = arith.constant 9.99999974E-6 : f32
    %110 = vector.broadcast %cst_52 : f32 to vector<1x30xf32>
    %111 = arith.addf %107, %110 : vector<1x30xf32>
    %112 = math.rsqrt %111 : vector<1x30xf32>
    %113 = vector.broadcast %112 : vector<1x30xf32> to vector<12x30xf32>
    %114 = arith.mulf %109, %113 : vector<12x30xf32>
    %cst_53 = arith.constant 0.000000e+00 : f32
    %115 = vector.broadcast %cst_53 : f32 to vector<12x30xf32>
    %116 = arith.cmpf ogt, %114, %115 : vector<12x30xf32>
    %cst_54 = arith.constant 0.000000e+00 : f32
    %117 = vector.broadcast %cst_54 : f32 to vector<12x30xf32>
    %118 = arith.minimumf %114, %117 : vector<12x30xf32>
    %119 = math.exp %118 : vector<12x30xf32>
    %cst_55 = arith.constant 1.000000e+00 : f32
    %120 = vector.broadcast %cst_55 : f32 to vector<12x30xf32>
    %121 = arith.subf %119, %120 : vector<12x30xf32>
    %122 = arith.select %116, %114, %121 : vector<12x30xi1>, vector<12x30xf32>
    %c0_56 = arith.constant 0 : index
    %c0_57 = arith.constant 0 : index
    %123 = vector.load %arg7[%c0_56, %c0_57] : memref<30x24xf32, #tpu.memory_space<vmem>>, vector<30x24xf32>
    %cst_58 = arith.constant dense<0.000000e+00> : vector<12x24xf32>
    %124 = tpu.matmul %122, %123, %cst_58 {dimension_numbers = #tpu.dot_dimension_numbers<[1], [0], [0], [1], [0, 0, 1, 1], [], []>} : vector<12x30xf32>, vector<30x24xf32>, vector<12x24xf32> -> vector<12x24xf32>
    %c0_59 = arith.constant 0 : index
    %c0_60 = arith.constant 0 : index
    %125 = vector.load %arg8[%c0_59, %c0_60] : memref<1x24xf32, #tpu.memory_space<vmem>>, vector<1x24xf32>
    %126 = vector.broadcast %125 : vector<1x24xf32> to vector<12x24xf32>
    %127 = arith.addf %124, %126 : vector<12x24xf32>
    %c0_61 = arith.constant 0 : index
    %c0_62 = arith.constant 0 : index
    %128 = vector.load %arg9[%c0_61, %c0_62] : memref<12x24xf32, #tpu.memory_space<vmem>>, vector<12x24xf32>
    tpu.vector_store %arg9[%c0_61, %c0_62], %127 {strides = array<i32>} : memref<12x24xf32, #tpu.memory_space<vmem>>, vector<12x24xf32>,
    return
  }
}

</mosaic_0001>

<bundles_post_ra>
// kernel: tpu_custom_call.1
= control target key start
LH: loop header
LB: loop body
LE: loop exit
PB: predicated region body
PF: predicated region fallthrough
CT: control target
= control target key end

     0   :  { %v35_v0 = vlaneseq  ;;  %vm101_vm0 = vcmask 1043456   ;;  %v1921_v2 = vmov 0.0|0.0   ;;  %s2217_s0 = inlined_call_operand.vmem [shape: s32[3,2,24], index: 0, kind: input, shape index: {}]   ;;  %s2218_s1 = inlined_call_operand.vmem [shape: f32[12,16], index: 1, kind: input, shape index: {}]   ;;  %s2219_s2 = inlined_call_operand.vmem [shape: f32[3,16,32], index: 2, kind: input, shape index: {}]   ;;  %s2220_s3 = inlined_call_operand.vmem [shape: f32[96,20], index: 3, kind: input, shape index: {}]   ;;  %s2221_s4 = inlined_call_operand.vmem [shape: f32[1,20], index: 4, kind: input, shape index: {}]   ;;  %s2222_s5 = inlined_call_operand.vmem [shape: f32[20,30], index: 5, kind: input, shape index: {}]   ;;  %s2223_s6 = inlined_call_operand.vmem [shape: f32[1,30], index: 6, kind: input, shape index: {}]   ;;  %s2224_s7 = inlined_call_operand.vmem [shape: f32[30,24], index: 7, kind: input, shape index: {}]   ;;  %s2225_s8 = inlined_call_operand.vmem [shape: f32[1,24], index: 8, kind: input, shape index: {}]   ;;  %s2226_s9 = inlined_call_operand.hbm [shape: f32[12,24], index: 9, kind: output, shape index: {}]  }
   0x1   :  { %v33_v1 = vld [vmem:[%s2218_s1] sm:$0xff]  ;;  %1800 = vmatprep.subr.bf16.mxu0 %v1921_v2  ;;  %v34_v3 = vld [vmem:[%s2218_s1 + $0x8] sm:$0xf] }
   0x2   :  { %14 = vsyncpa [#allocation3], 0  ;;  %v1985_v4 = vshrl.u32 %v35_v0, 7  ;;  %v1987_v5 = vpack.c.bf16 %v34_v3, %v33_v1  ;;  %vm1922_vm1 = vmmov 1   ;;  %vm1923_vm3 = vmmov 0   ;;  %v267_v29 = vld [vmem:[%s2219_s2] sm:$0xff] }
   0x3   :  { %vm1991_vm2 = vmpackc.low %vm101_vm0, %vm1922_vm1  ;;  %v1924_v7 = vmov 0.0   ;;  %v38_v8 = vld [vmem:[%s2217_s0] sm:$0x3]  ;;  %vm91_vm6 = vcmask 97280   ;;  %vm185_vm8 = vcmask 195584   ;;  %v268_v30 = vld [vmem:[%s2219_s2 + $0x8] sm:$0xff] }
   0x4   :  { %1664 = vmatprep.mubr.msk.f32.mxu0 %vm1923_vm3, %v1924_v7  ;;  %v2001_v9 = vsub.s32 1, %v1985_v4  ;;  %v2004_v10 = vadd.s32 8, %v1985_v4  ;;  %1803 = vmatpush3.bf16.msk.msra.mxu0 %vm1991_vm2, %v1987_v5  ;;  %v2022_v17 = vsub.s32 0, %v1985_v4  ;;  %v1540_v20 = vld [vmem:[%s2217_s0 + $0x2] sm:$0x3]  ;;  %v1808_v33 = vpack.c.bf16 %v268_v30, %v267_v29  ;;  %v1551_v53 = vld [vmem:[%s2219_s2 + $0x10] sm:$0xff] }
   0x5   :  { %vm269_vm12 = vcmask 130048   ;;  %v1559_v42 = vld [vmem:[%s2217_s0 + $0x4] sm:$0x3]  ;;  %v1552_v54 = vld [vmem:[%s2219_s2 + $0x18] sm:$0xff]  ;;  %v664_v60 = vld [vmem:[%s2220_s3 + $0x28] sm:$0xff]  ;;  %s1925_s0 = smov [#allocation2]  }
   0x6   :  { %v52_v11 = vrot.slane %v38_v8, %v2001_v9  ;;  %v42_v18 = vrot.slane %v38_v8, %v2022_v17  ;;  %v370_v21 = vrot.slane %v1540_v20, %v2001_v9  ;;  %v360_v40 = vrot.slane %v1540_v20, %v2022_v17  ;;  %v663_v59 = vld [vmem:[%s2220_s3 + $0x20] sm:$0xff]  ;;  %v665_v61 = vld [vmem:[%s2220_s3 + $0x30] sm:$0xff]  ;;  %v666_v63 = vld [vmem:[%s2220_s3 + $0x38] sm:$0xff] }
   0x7   :  { %v845_v43 = vrot.slane %v1559_v42, %v2001_v9  ;;  %v1820_v57 = vpack.c.bf16 %v1552_v54, %v1551_v53  ;;  %v1824_v62 = vpack.c.bf16 %v664_v60, %v663_v59  ;;  %v1828_v0 = vpack.c.bf16 %v666_v63, %v665_v61  ;;  %v352_v6 = vld [vmem:[%s2220_s3 + $0x8] sm:$0xff]  ;;  %v1138_v29 = vld [vmem:[%s2220_s3 + $0x40] sm:$0xff] }
   0x8   :  { %vm53_vm4 = vcmp.eq.s32.totalorder %v1985_v4, %v52_v11  ;;  %vm54_vm5 = vcmp.eq.s32.totalorder %v2004_v10, %v52_v11  ;;  %vm43_vm7 = vcmp.eq.s32.totalorder %v1985_v4, %v42_v18  ;;  %vm371_vm9 = vcmp.eq.s32.totalorder %v1985_v4, %v370_v21 }
   0x9   :  { %v1530_v12 = vsel %vm53_vm4, 1.0, %v1924_v7  ;;  %v1531_v13 = vsel %vm54_vm5, 1.0, %v1924_v7  ;;  %v1528_v19 = vsel %vm43_vm7, 1.0, %v1924_v7  ;;  %vm372_vm10 = vcmp.eq.s32.totalorder %v2004_v10, %v370_v21 }
   0xa   :  { %59 = vxpose.xlu0.b32.start [1/2] (short) (narrow) %v1530_v12, 24  ;;  %1679 = vmatprep.mubr.msk.f32.mxu1 %vm185_vm8, %v1528_v19  ;;  %v1543_v22 = vsel %vm371_vm9, 1.0, %v1924_v7  ;;  %v1544_v23 = vsel %vm372_vm10, 1.0, %v1924_v7  ;;  %vm44_vm11 = vcmp.eq.s32.totalorder %v2004_v10, %v42_v18  ;;  %vm361_vm13 = vcmp.eq.s32.totalorder %v1985_v4, %v360_v40 }
   0xb   :  { %377 = vxpose.xlu1.b32.start [1/2] (short) (narrow) %v1543_v22, 24  ;;  %v1529_v34 = vsel %vm44_vm11, 1.0, %v1924_v7  ;;  %v1541_v41 = vsel %vm361_vm13, 1.0, %v1924_v7  ;;  %vm846_vm14 = vcmp.eq.s32.totalorder %v1985_v4, %v845_v43  ;;  %vm847_vm15 = vcmp.eq.s32.totalorder %v2004_v10, %v845_v43 }
   0xc   :  { %v1562_v44 = vsel %vm846_vm14, 1.0, %v1924_v7  ;;  %v1563_v45 = vsel %vm847_vm15, 1.0, %v1924_v7  ;;  %vm362_vm4 = vcmp.eq.s32.totalorder %v2004_v10, %v360_v40  ;;  %v835_v12 = vrot.slane %v1559_v42, %v2022_v17  ;;  %v1571_v17 = vld [vmem:[%s2219_s2 + $0x28] sm:$0xff]  ;;  %v1279_v40 = vld [vmem:[%s2222_s5 + $0x10] sm:$0xf] }
   0xd   :  { %v1542_v58 = vsel %vm362_vm4, 1.0, %v1924_v7  ;;  %vm1234_vm7 = vcmask 162816   ;;  %vm1430_vm10 = vcmask 1045504   ;;  %vm1371_vm13 = vcmask 244736  }
   0xe   :  { %60 = vxpose.xlu0.b32.end [2/2] (short) (narrow) %v1531_v13, 24  ;;  %vm837_vm5 = vcmp.eq.s32.totalorder %v2004_v10, %v835_v12  ;;  %v1139_v10 = vld [vmem:[%s2220_s3 + $0x48] sm:$0xff]  ;;  %vm1869_vm11 = vmpackc.low %vm1430_vm10, %vm1922_vm1  ;;  %vm1510_vm15 = vcmask 191488  }
   0xf   :  { %378 = vxpose.xlu1.b32.end [2/2] (short) (narrow) %v1544_v23, 24  ;;  %v1852_v30 = vpack.c.bf16 %v1139_v10, %v1138_v29 }
  0x13   :  { %852 = vxpose.xlu0.b32.start [1/2] (short) (narrow) %v1562_v44, 24 }
  0x17   :  { %853 = vxpose.xlu0.b32.end [2/2] (short) (narrow) %v1563_v45, 24 }
  0x8a   :  { %v75_v14 = vpop.trf.xlu0 }
  0x8b   :  { %1665 = vmatmul.mubr.msk.f32.vlgmr.msra.gmra.mrb[0].mxu0 %vm91_vm6, %v75_v14  ;;  %v393_v36 = vpop.trf.xlu1  ;;  %v353_v14 = vld [vmem:[%s2220_s3 + $0x10] sm:$0xff] }
  0x8c   :  { %1667 = vmatprep.mubr.msk.f32.mxu0 %vm1923_vm3, %v1924_v7 }
  0x8e   :  { %v76_v15 = vpop.trf.xlu0 }
  0x8f   :  { %1668 = vmatmul.mubr.msk.f32.gmra.mrb[2].mxu0 %vm91_vm6, %v76_v15  ;;  %v394_v38 = vpop.trf.xlu1  ;;  %v354_v15 = vld [vmem:[%s2220_s3 + $0x18] sm:$0xff] }
  0x90   :  { %1670 = vmatprep.mubr.msk.f32.mxu0 %vm1923_vm3, %v1924_v7  ;;  %v1836_v19 = vpack.c.bf16 %v354_v15, %v353_v14 }
  0x92   :  { %v77_v16 = vpop.trf.xlu0 }
  0x93   :  { %1671 = vmatmul.mubr.msk.f32.gmra.mrb[4].mxu0 %vm91_vm6, %v77_v16  ;;  %v395_v39 = vpop.trf.xlu1 }
  0x94   :  { %1708 = vmatprep.mubr.msk.f32.mxu0 %vm185_vm8, %v1541_v41  ;;  %v1576_v41 = vld [vmem:[%s2221_s4] ss:$0 sm:$0xff] }
 0x15e   :  { %v171_v24 = vpop.f32.mrb[0].mxu0 }
 0x15f   :  { %v1666_v25 = vpop.f32.mrb[1].mxu0 }
 0x162   :  { %v176_v26 = vpop.f32.mrb[2].mxu0 }
 0x163   :  { %v1804_v27 = vpack.c.bf16 %v176_v26, %v171_v24  ;;  %v1669_v28 = vpop.f32.mrb[3].mxu0 }
 0x164   :  { %v1561_v28 = vsel %vm837_vm5, 1.0, %v1924_v7 }
 0x165   :  { %1805 = vmatprep.subr.bf16.mxu1 %v1804_v27 }
 0x166   :  { %1807 = vmatpush3.bf16.msra.mxu1 %v1804_v27  ;;  %v181_v31 = vpop.f32.mrb[4].mxu0 }
 0x167   :  { %v1672_v32 = vpop.f32.mrb[5].mxu0  ;;  %1677 = vmatprep.subr.mxu1 %v181_v31 }
 0x16a   :  { %1678 = vmatpush3.msra.mxu1 %v181_v31  ;;  %v1140_v31 = vld [vmem:[%s2220_s3 + $0x50] sm:$0xff] }
 0x16b   :  { %1680 = vmatmul.mubr.msk.f32.vlgmr.msra.gmra.mrb[0].mxu1 %vm185_vm8, %v1529_v34  ;;  %1809 = vmatprep.subr.bf16.mxu1 %v1808_v33 }
 0x16c   :  { %1811 = vmatpush3.bf16.msra.mxu1 %v1808_v33 }
 0x16d   :  { %1812 = vmatprep.subr.bf16.mxu1 %v1921_v2 }
 0x23e   :  { %v1681_v35 = vpop.f32.mrb[0].mxu1 }
 0x23f   :  { %v258_v37 = vpop.f32.mrb[1].mxu1 }
 0x240   :  { %1686 = vmatprep.mubr.msk.f32.mxu1 %vm269_vm12, %v258_v37  ;;  %v1277_v37 = vld [vmem:[%s2222_s5] sm:$0xff] }
 0x241   :  { %1687 = vmatmul.mubr.msk.f32.vlgmr.msra.gmra.mrb[2].mxu1 %vm269_vm12, %v1681_v35 }
 0x242   :  { %1815 = vmatpush3.bf16.msk.msra.mxu1 %vm1991_vm2, %v1987_v5  ;;  %1693 = vmatprep.mubr.msk.f32.mxu1 %vm1923_vm3, %v1924_v7 }
 0x243   :  { %1825 = vmatprep.subr.bf16.mxu1 %v1824_v62 }
 0x245   :  { %1694 = vmatmul.mubr.msk.f32.vlgmr.msra.gmra.mrb[4].mxu1 %vm91_vm6, %v393_v36 }
 0x246   :  { %1696 = vmatprep.mubr.msk.f32.mxu1 %vm1923_vm3, %v1924_v7  ;;  %1827 = vmatpush3.bf16.msra.mxu1 %v1824_v62 }
 0x247   :  { %1829 = vmatprep.subr.bf16.mxu1 %v1828_v0 }
 0x249   :  { %1697 = vmatmul.mubr.msk.f32.gmra.mrb[6].mxu1 %vm91_vm6, %v394_v38  ;;  %v1278_v38 = vld [vmem:[%s2222_s5 + $0x8] sm:$0xff] }
 0x24a   :  { %1699 = vmatprep.mubr.msk.f32.mxu1 %vm1923_vm3, %v1924_v7  ;;  %1831 = vmatpush3.bf16.msra.mxu1 %v1828_v0 }
 0x24d   :  { %1700 = vmatmul.mubr.msk.f32.gmra.mrb[8].mxu1 %vm91_vm6, %v395_v39  ;;  %v1860_v39 = vpack.c.bf16 %v1278_v38, %v1277_v37 }
 0x314   :  { %v2072_v46 = vpop.f32.mrb[2].mxu1 }
 0x315   :  { %v2074_v47 = vpop.f32.mrb[3].mxu1 }
 0x318   :  { %v484_v48 = vpop.f32.mrb[4].mxu1 }
 0x319   :  { %v1695_v49 = vpop.f32.mrb[5].mxu1 }
 0x31c   :  { %v489_v50 = vpop.f32.mrb[6].mxu1 }
 0x31d   :  { %v1816_v51 = vpack.c.bf16 %v489_v50, %v484_v48  ;;  %v1698_v52 = vpop.f32.mrb[7].mxu1 }
 0x31f   :  { %1817 = vmatprep.subr.bf16.mxu0 %v1816_v51 }
 0x320   :  { %1819 = vmatpush3.bf16.msra.mxu0 %v1816_v51  ;;  %v494_v55 = vpop.f32.mrb[8].mxu1 }
 0x321   :  { %v1701_v56 = vpop.f32.mrb[9].mxu1  ;;  %1706 = vmatprep.subr.mxu0 %v494_v55 }
 0x324   :  { %1707 = vmatpush3.msra.mxu0 %v494_v55 }
 0x325   :  { %1709 = vmatmul.mubr.msk.f32.vlgmr.msra.gmra.mrb[6].mxu0 %vm185_vm8, %v1542_v58  ;;  %1821 = vmatprep.subr.bf16.mxu0 %v1820_v57 }
 0x326   :  { %1823 = vmatpush3.bf16.msra.mxu0 %v1820_v57 }
 0x327   :  { %1840 = vmatprep.subr.bf16.mxu0 %v1921_v2  ;;  %v868_v2 = vpop.trf.xlu0 }
 0x32b   :  { %v869_v8 = vpop.trf.xlu0 }
 0x32f   :  { %v870_v9 = vpop.trf.xlu0 }
 0x3f8   :  { %v1710_v1 = vpop.f32.mrb[6].mxu0 }
 0x3f9   :  { %v570_v3 = vpop.f32.mrb[7].mxu0 }
 0x3fa   :  { %1715 = vmatprep.mubr.msk.f32.mxu0 %vm269_vm12, %v570_v3 }
 0x3fb   :  { %1716 = vmatmul.mubr.msk.f32.vlgmr.msra.gmra.mrb[8].mxu0 %vm269_vm12, %v1710_v1 }
 0x3fc   :  { %1843 = vmatpush3.bf16.msk.msra.mxu0 %vm1991_vm2, %v1987_v5  ;;  %1744 = vmatprep.mubr.msk.f32.mxu0 %vm1923_vm3, %v1924_v7  ;;  %v351_v5 = vld [vmem:[%s2220_s3] sm:$0xff]  ;;  %vm836_vm2 = vcmp.eq.s32.totalorder %v1985_v4, %v835_v12 }
 0x3fd   :  { %v1832_v11 = vpack.c.bf16 %v352_v6, %v351_v5  ;;  %v1560_v13 = vsel %vm836_vm2, 1.0, %v1924_v7  ;;  %v1570_v4 = vld [vmem:[%s2219_s2 + $0x20] sm:$0xff]  ;;  %s1517_s2 = sshll.u32 %s1925_s0, 4  ;;  %s1518_s2 = int_to_ptr.vmem [resolvable:$true] %s1517_s2 }
 0x3fe   :  { %v1848_v22 = vpack.c.bf16 %v1571_v17, %v1570_v4  ;;  %s1897_s22 = scalar_lea.vmem %s1518_s2, 256  ;;  %p1902_p1 = scmp.lt.s32.totalorder %s1518_s2, %s1518_s2 }
 0x3ff   :  { %1745 = vmatmul.mubr.msk.f32.vlgmr.msra.gmra.mrb[10].mxu0 %vm91_vm6, %v868_v2  ;;  %1833 = vmatprep.subr.bf16.mxu1 %v1832_v11  ;;  %p1898_p0 = scmp.ne.s32.totalorder %s1518_s2, %s1897_s22  ;;  %p1903_p2 = scmp.lt.s32.totalorder %s1897_s22, %s1897_s22 }
 0x400   :  { %1747 = vmatprep.mubr.msk.f32.mxu0 %vm1923_vm3, %v1924_v7 }
 0x401   :  { %p1904_p3 = por %p1903_p2, %p1902_p1 }
 0x403   :  { %1748 = vmatmul.mubr.msk.f32.gmra.mrb[12].mxu0 %vm91_vm6, %v869_v8  ;;  %p1905_p4 = pnand %p1904_p3, %p1898_p0 }
 0x404   :  { %1750 = vmatprep.mubr.msk.f32.mxu0 %vm1923_vm3, %v1924_v7  ;;  %vm667_vm3 = vcmask 261120   ;;  %v1141_v7 = vld [vmem:[%s2220_s3 + $0x58] sm:$0xff] }
 0x405   :  { %v1856_v34 = vpack.c.bf16 %v1141_v7, %v1140_v31 }
 0x407   :  { %1751 = vmatmul.mubr.msk.f32.gmra.mrb[14].mxu0 %vm91_vm6, %v870_v9  ;;  %vm1236_vm6 = vcmask 158720  }
 0x408   :  { %1759 = vmatprep.mubr.msk.f32.mxu0 %vm185_vm8, %v1560_v13 }
 0x4ce   :  { %v1717_v16 = vpop.f32.mrb[8].mxu0 }
 0x4cf   :  { %v654_v18 = vpop.f32.mrb[9].mxu0 }
 0x4d0   :  { %1726 = vmatprep.mubr.msk.f32.mxu1 %vm667_vm3, %v654_v18 }
 0x4d1   :  { %1727 = vmatmul.mubr.msk.f32.vlgmr.msra.gmra.mrb[10].mxu1 %vm667_vm3, %v1717_v16 }
 0x4d2   :  { %1835 = vmatpush3.bf16.msra.mxu1 %v1832_v11  ;;  %1737 = vmatprep.mubr.msk.f32.mxu1 %vm667_vm3, %v2074_v47  ;;  %v959_v20 = vpop.f32.mrb[10].mxu0 }
 0x4d3   :  { %v1746_v21 = vpop.f32.mrb[11].mxu0  ;;  %1837 = vmatprep.subr.bf16.mxu1 %v1836_v19 }
 0x4d6   :  { %1839 = vmatpush3.bf16.msra.mxu1 %v1836_v19  ;;  %v964_v23 = vpop.f32.mrb[12].mxu0 }
 0x4d7   :  { %v1844_v24 = vpack.c.bf16 %v964_v23, %v959_v20  ;;  %v1749_v25 = vpop.f32.mrb[13].mxu0  ;;  %1849 = vmatprep.subr.bf16.mxu1 %v1848_v22  ;;  %v1414_v23 = vld [vmem:[%s2224_s7 + $0x8] sm:$0xff] }
 0x4d9   :  { %1738 = vmatmul.mubr.msk.f32.vlgmr.msra.gmra.mrb[10].mxu1 %vm667_vm3, %v2072_v46  ;;  %1845 = vmatprep.subr.bf16.mxu0 %v1844_v24 }
 0x4da   :  { %1847 = vmatpush3.bf16.msra.mxu0 %v1844_v24  ;;  %v969_v26 = vpop.f32.mrb[14].mxu0  ;;  %1851 = vmatpush3.bf16.msra.mxu1 %v1848_v22  ;;  %v1413_v22 = vld [vmem:[%s2224_s7] sm:$0xff]  ;;  %v1415_v24 = vld [vmem:[%s2224_s7 + $0x10] sm:$0xff] }
 0x4db   :  { %1757 = vmatprep.subr.mxu0 %v969_v26  ;;  %v1752_v27 = vpop.f32.mrb[15].mxu0  ;;  %1853 = vmatprep.subr.bf16.mxu1 %v1852_v30  ;;  %v1864_v25 = vpack.c.bf16 %v1414_v23, %v1413_v22 }
 0x4de   :  { %1758 = vmatpush3.msra.mxu0 %v969_v26  ;;  %v1416_v26 = vld [vmem:[%s2224_s7 + $0x18] sm:$0x3f] }
 0x4df   :  { %1760 = vmatmul.mubr.msk.f32.vlgmr.msra.gmra.mrb[16].mxu0 %vm185_vm8, %v1561_v28  ;;  %1861 = vmatprep.subr.bf16.mxu0 %v1860_v39  ;;  %v1868_v27 = vpack.c.bf16 %v1416_v26, %v1415_v24  ;;  %v1579_v28 = vld [vmem:[%s2223_s6] ss:$0 sm:$0xff] }
 0x4e0   :  { %1863 = vmatpush3.bf16.msra.mxu0 %v1860_v39 }
 0x4e1   :  { %1784 = vmatprep.subr.msk.mxu0 %vm101_vm0, %v1279_v40 }
 0x4e4   :  { %1785 = vmatpush3.msk.msra.mxu0 %vm101_vm0, %v1279_v40 }
 0x4e5   :  { %1865 = vmatprep.subr.bf16.mxu0 %v1864_v25 }
 0x5b2   :  { %v1761_v32 = vpop.f32.mrb[16].mxu0 }
 0x5b3   :  { %v1045_v33 = vpop.f32.mrb[17].mxu0 }
 0x5b4   :  { %1766 = vmatprep.mubr.msk.f32.mxu1 %vm269_vm12, %v1045_v33 }
 0x5b5   :  { %1767 = vmatmul.mubr.msk.f32.vlgmr.msra.gmra.mrb[12].mxu1 %vm269_vm12, %v1761_v32  ;;  %vm1373_vm12 = vcmask 240640  }
 0x5b6   :  { %1855 = vmatpush3.bf16.msra.mxu1 %v1852_v30 }
 0x5b7   :  { %1857 = vmatprep.subr.bf16.mxu1 %v1856_v34 }
 0x5ba   :  { %1859 = vmatpush3.bf16.msra.mxu1 %v1856_v34 }
 0x688   :  { %v1768_v35 = vpop.f32.mrb[12].mxu1 }
 0x689   :  { %v1129_v36 = vpop.f32.mrb[13].mxu1 }
 0x68a   :  { %1777 = vmatprep.mubr.msk.f32.mxu1 %vm667_vm3, %v1129_v36 }
 0x68b   :  { %1778 = vmatmul.mubr.msk.f32.vlgmr.msra.gmra.mrb[10].mxu1 %vm667_vm3, %v1768_v35 }
 0x75e   :  { %v1779_v42 = vpop.f32.mrb[10].mxu1 }
 0x75f   :  { %v1233_v43 = vadd.f32 %v1779_v42, %v1576_v41  ;;  %v1214_v44 = vpop.f32.mrb[11].mxu1 }
 0x760   :  { %v1232_v45 = vadd.f32 %v1576_v41, %v1214_v44 }
 0x761   :  { %v1237_v46 = vsel %vm1236_vm6, %v1233_v43, 0.0 }
 0x762   :  { %v1235_v47 = vsel %vm1234_vm7, %v1232_v45, 0.0 }
 0x763   :  { %v1238_v48 = vadd.f32 %v1237_v46, %v1235_v47 }
 0x765   :  { %v1239_v49 = vrot.slane %v1238_v48, 4 }
 0x767   :  { %v1240_v50 = vadd.f32 %v1239_v49, %v1238_v48 }
 0x769   :  { %v1241_v51 = vrot.slane %v1240_v50, 2 }
 0x76b   :  { %v1242_v52 = vadd.f32 %v1241_v51, %v1240_v50 }
 0x76d   :  { %v1243_v53 = vrot.slane %v1242_v52, 1 }
 0x76f   :  { %v1244_v54 = vadd.f32 %v1243_v53, %v1242_v52 }
 0x771   :  { %v1246_v55 = vmul.f32 0.083333336, %v1244_v54 }
 0x773   :  { %v1247_v56 = vsub.f32 %v1232_v45, %v1246_v55  ;;  %v1248_v57 = vsub.f32 %v1233_v43, %v1246_v55 }
 0x775   :  { %v1249_v58 = vmul.f32 %v1247_v56, %v1247_v56  ;;  %v1250_v59 = vmul.f32 %v1248_v57, %v1248_v57 }
 0x777   :  { %v1251_v60 = vsel %vm1234_vm7, %v1249_v58, 0.0  ;;  %v1252_v61 = vsel %vm1236_vm6, %v1250_v59, 0.0 }
 0x778   :  { %v1253_v62 = vadd.f32 %v1252_v61, %v1251_v60 }
 0x77a   :  { %v1254_v63 = vrot.slane %v1253_v62, 4 }
 0x77c   :  { %v1255_v0 = vadd.f32 %v1254_v63, %v1253_v62 }
 0x77e   :  { %v1256_v1 = vrot.slane %v1255_v0, 2 }
 0x780   :  { %v1257_v2 = vadd.f32 %v1256_v1, %v1255_v0 }
 0x782   :  { %v1258_v3 = vrot.slane %v1257_v2, 1 }
 0x784   :  { %v1259_v8 = vadd.f32 %v1258_v3, %v1257_v2 }
 0x786   :  { %v1260_v9 = vmul.f32 0.083333336, %v1259_v8 }
 0x788   :  { %v1261_v5 = vadd.f32 1e-05, %v1260_v9  ;;  %v1585_v9 = vld [vmem:[%s2225_s8] ss:$0 sm:$0xff] }
 0x78a   :  { %1885 = vrsqrt.f32 %v1261_v5 }
 0x794   :  { %v1886_v6 = vpop.eup %1885 }
 0x795   :  { %v1263_v11 = vmul.f32 %v1886_v6, %v1247_v56  ;;  %v1264_v12 = vmul.f32 %v1886_v6, %v1248_v57 }
 0x797   :  { %v1267_v13 = vmin.f32 %v1263_v11, 0.0  ;;  %v1268_v14 = vmin.f32 %v1264_v12, 0.0  ;;  %vm1265_vm0 = vcmp.gt.f32.partialorder %v1263_v11, 0.0  ;;  %vm1266_vm9 = vcmp.gt.f32.partialorder %v1264_v12, 0.0 }
 0x799   :  { %v1269_v15 = vmul.f32 1.442695, %v1267_v13  ;;  %v1271_v16 = vmul.f32 1.442695, %v1268_v14 }
 0x79b   :  { %1887 = vpow2.f32 %v1269_v15 }
 0x79c   :  { %1889 = vpow2.f32 %v1271_v16 }
 0x7a5   :  { %v1888_v18 = vpop.eup %1887 }
 0x7a6   :  { %v1890_v19 = vpop.eup %1889  ;;  %v1577_v4 = vadd.f32 -1.0, %v1888_v18 }
 0x7a7   :  { %v1578_v17 = vadd.f32 -1.0, %v1890_v19 }
 0x7a8   :  { %v1275_v20 = vsel %vm1265_vm0, %v1263_v11, %v1577_v4 }
 0x7a9   :  { %1786 = vmatprep.mubr.msk.f32.mxu0 %vm1234_vm7, %v1275_v20  ;;  %v1276_v21 = vsel %vm1266_vm9, %v1264_v12, %v1578_v17 }
 0x7aa   :  { %1787 = vmatmul.mubr.msk.f32.vlgmr.msra.gmra.mrb[18].mxu0 %vm1234_vm7, %v1276_v21 }
 0x7ab   :  { %1867 = vmatpush3.bf16.msra.mxu0 %v1864_v25 }
 0x7ac   :  { %1870 = vmatprep.subr.msk.bf16.mxu0 %vm1869_vm11, %v1868_v27 }
 0x7af   :  { %1873 = vmatpush3.bf16.msk.msra.mxu0 %vm1869_vm11, %v1868_v27 }
 0x87d   :  { %v1788_v29 = vpop.f32.mrb[18].mxu0 }
 0x87e   :  { %v1368_v10 = vadd.f32 %v1788_v29, %v1579_v28  ;;  %v1362_v30 = vpop.f32.mrb[19].mxu0 }
 0x87f   :  { %v1363_v31 = vadd.f32 %v1579_v28, %v1362_v30 }
 0x880   :  { %v1374_v7 = vsel %vm1373_vm12, %v1368_v10, 0.0 }
 0x881   :  { %v1372_v32 = vsel %vm1371_vm13, %v1363_v31, 0.0 }
 0x882   :  { %v1375_v33 = vadd.f32 %v1374_v7, %v1372_v32 }
 0x884   :  { %v1376_v34 = vrot.slane %v1375_v33, 4 }
 0x886   :  { %v1377_v35 = vadd.f32 %v1376_v34, %v1375_v33 }
 0x888   :  { %v1378_v36 = vrot.slane %v1377_v35, 2 }
 0x88a   :  { %v1379_v37 = vadd.f32 %v1378_v36, %v1377_v35 }
 0x88c   :  { %v1380_v38 = vrot.slane %v1379_v37, 1 }
 0x88e   :  { %v1381_v39 = vadd.f32 %v1380_v38, %v1379_v37 }
 0x890   :  { %v1382_v40 = vmul.f32 0.083333336, %v1381_v39 }
 0x892   :  { %v1383_v41 = vsub.f32 %v1363_v31, %v1382_v40  ;;  %v1384_v42 = vsub.f32 %v1368_v10, %v1382_v40 }
 0x894   :  { %v1385_v43 = vmul.f32 %v1383_v41, %v1383_v41  ;;  %v1386_v44 = vmul.f32 %v1384_v42, %v1384_v42 }
 0x896   :  { %v1387_v45 = vsel %vm1371_vm13, %v1385_v43, 0.0  ;;  %v1388_v46 = vsel %vm1373_vm12, %v1386_v44, 0.0 }
 0x897   :  { %v1389_v47 = vadd.f32 %v1388_v46, %v1387_v45 }
 0x899   :  { %v1390_v48 = vrot.slane %v1389_v47, 4 }
 0x89b   :  { %v1391_v49 = vadd.f32 %v1390_v48, %v1389_v47 }
 0x89d   :  { %v1392_v50 = vrot.slane %v1391_v49, 2 }
 0x89f   :  { %v1393_v51 = vadd.f32 %v1392_v50, %v1391_v49 }
 0x8a1   :  { %v1394_v52 = vrot.slane %v1393_v51, 1 }
 0x8a3   :  { %v1395_v53 = vadd.f32 %v1394_v52, %v1393_v51 }
 0x8a5   :  { %v1396_v54 = vmul.f32 0.083333336, %v1395_v53 }
 0x8a7   :  { %v1397_v55 = vadd.f32 1e-05, %v1396_v54 }
 0x8a9   :  { %1891 = vrsqrt.f32 %v1397_v55 }
 0x8b3   :  { %v1892_v56 = vpop.eup %1891 }
 0x8b4   :  { %v1399_v57 = vmul.f32 %v1892_v56, %v1383_v41  ;;  %v1400_v58 = vmul.f32 %v1892_v56, %v1384_v42 }
 0x8b6   :  { %v1403_v59 = vmin.f32 %v1399_v57, 0.0  ;;  %v1404_v60 = vmin.f32 %v1400_v58, 0.0  ;;  %vm1401_vm1 = vcmp.gt.f32.partialorder %v1399_v57, 0.0  ;;  %vm1402_vm14 = vcmp.gt.f32.partialorder %v1400_v58, 0.0 }
 0x8b8   :  { %v1405_v61 = vmul.f32 1.442695, %v1403_v59  ;;  %v1407_v62 = vmul.f32 1.442695, %v1404_v60 }
 0x8ba   :  { %1893 = vpow2.f32 %v1405_v61 }
 0x8bb   :  { %1895 = vpow2.f32 %v1407_v62 }
 0x8c4   :  { %v1894_v63 = vpop.eup %1893 }
 0x8c5   :  { %v1896_v0 = vpop.eup %1895  ;;  %v1583_v1 = vadd.f32 -1.0, %v1894_v63 }
 0x8c6   :  { %v1584_v2 = vadd.f32 -1.0, %v1896_v0 }
 0x8c7   :  { %v1411_v3 = vsel %vm1401_vm1, %v1399_v57, %v1583_v1 }
 0x8c8   :  { %1797 = vmatprep.mubr.msk.f32.mxu0 %vm1371_vm13, %v1411_v3  ;;  %v1412_v8 = vsel %vm1402_vm14, %v1400_v58, %v1584_v2 }
 0x8c9   :  { %1798 = vmatmul.mubr.msk.f32.vlgmr.msra.gmra.mrb[20].mxu0 %vm1371_vm13, %v1412_v8 }
 0x99c   :  { %v1799_v5 = vpop.f32.mrb[20].mxu0 }
 0x99d   :  { %v1506_v6 = vadd.f32 %v1799_v5, %v1585_v9  ;;  %v1500_v11 = vpop.f32.mrb[21].mxu0 }
 0x99e   :  { %v1501_v12 = vadd.f32 %v1585_v9, %v1500_v11 }
 0x99f   :  { %1511 = vst.msk [vmem:[#allocation2 + $0x8] sm:$0xf] %vm1510_vm15, %v1506_v6 }
 0x9a0   :  { %1509 = vst.msk [vmem:[#allocation2] sm:$0xff] %vm185_vm8, %v1501_v12 }
 0x9a1   :  { %1908 = shalt.err (!%p1905_p4)
}
 0x9a2   :  { %s1909_s24 = scalar_lea.hbm %s2226_s9, 256 }
 0x9a3   :  { %p1910_p5 = scmp.ne.s32.totalorder %s2226_s9, %s1909_s24  ;;  %p1913_p6 = scmp.lt.u32.totalorder %s1909_s24, %s2226_s9 }
 0x9a5   :  { %p1915_p7 = pnand %p1913_p6, %p1910_p5 }
 0x9a7   :  { %1918 = shalt.err (!%p1915_p7)
}
 0x9a8   :  { %s1926_s29 = smov 128   ;;  %s1927_s30 = smov 8  }
 0x9a9   :  { %1523 = dma.vmem_to_hbm [thread:$0]  %s1518_s2, 256, %s2226_s9, [#allocation3], %s1926_s29, %s1926_s29, %s1927_s30  }
 0x9aa   :  { %1919 = dma.done.wait [#allocation3], 256  }
 0x9ab   :  { %1920 = vsyncadd [#allocation3], 4294967040 }
 0x9ac   :  { %1527 = vsyncpa [#allocation3], 1 }

</bundles_post_ra>
